<compile_context>
chip_gen: v6e
topology: v6e:2x2x1
jax: 0.10.0
libtpu: 0.0.40
codegen_flags: <defaults>
</compile_context>

<pallas_src>
import jax
import jax.numpy as jnp
from jax.experimental import pallas as pl
from jax.experimental.pallas import tpu as pltpu


def _round_up(x, m):
    return ((x + m - 1) // m) * m


def _nll_partial_kernel(pred_ref, tgt_ref, out_ref):
    # pred_ref: (TILE_N, TILE_C) log-probabilities, native dtype
    # tgt_ref : (TILE_N, 1) int32 class indices (-1 in padded rows)
    # out_ref : (8, 128) f32 accumulator, resident across the class axis j
    j = pl.program_id(1)

    @pl.when(j == 0)
    def _():
        out_ref[...] = jnp.zeros_like(out_ref)

    pred = pred_ref[...].astype(jnp.float32)   # upcast in-kernel, accumulate f32
    tn, tc = pred.shape
    # Fold the class-block offset into the (TILE_N, 1) scalar column so the
    # (TILE_N, TILE_C) iota is grid-invariant.
    tgt_local = tgt_ref[...] - j * tc          # (TILE_N, 1) int32
    col = jax.lax.broadcasted_iota(jnp.int32, (tn, tc), 1)
    # Select (not multiply) so -inf / garbage in non-target or padded positions
    # never becomes NaN.  Padded rows have target -1 (< 0, never matches);
    # padded class columns never match a valid (< C) target.
    mask = col == tgt_local
    partial = jnp.sum(jnp.where(mask, pred, 0.0))
    out_ref[...] += jnp.broadcast_to(partial, out_ref.shape)


def _choose_tiles(n, c, itemsize, sub):
    """Pick (TILE_N, TILE_C).  Prefer full rows (contiguous pred DMAs); keep a
    pred block around ~4 MiB per buffer (fits double-buffered in scoped VMEM
    on v5e/v6e/v7x), and leave >= 8 row blocks for v7x's 2 TensorCores."""
    budget = 4 * 1024 * 1024
    c_pad_full = max(_round_up(c, 128), 128)
    if c_pad_full * itemsize * sub <= budget:
        tile_c = c                              # full rows: contiguous HBM reads
    else:
        tile_c = max(128, (budget // (itemsize * sub)) // 128 * 128)
    c_pad_tile = max(_round_up(min(tile_c, c), 128), 128)
    tile_n = budget // (c_pad_tile * itemsize)
    tile_n = max(sub, (tile_n // sub) * sub)    # sublane-packing aligned
    if n >= 8 * sub:                            # keep >= 8 parallel row blocks
        tile_n = min(tile_n, max(sub, (n // 8) // sub * sub))
    if n <= tile_n:
        tile_n = n                              # full-dim block is always legal
    return tile_n, tile_c


def nll_loss(pred, target, *, tile_n=None, tile_c=None):
    """Pallas TPU implementation of F.nll_loss(pred, target) (mean reduction).

    pred:   (N, C) log-probabilities (any float dtype; streamed natively)
    target: (N,)   integer class indices in [0, C)
    returns scalar float32
    """
    n, c = pred.shape
    itemsize = int(pred.dtype.itemsize)
    sub = 8 * max(1, 4 // max(itemsize, 1))     # 8 f32, 16 bf16, 32 int8/fp8

    auto_tn, auto_tc = _choose_tiles(n, c, itemsize, sub)
    if tile_c is None:
        tile_c = auto_tc
    else:
        tile_c = min(tile_c, c)
        if tile_c != c:
            tile_c = max(128, (tile_c // 128) * 128)
    if tile_n is None:
        tile_n = auto_tn
    else:
        tile_n = min(tile_n, n)
        if tile_n != n:
            tile_n = max(sub, (tile_n // sub) * sub)

    num_n = pl.cdiv(n, tile_n)
    num_c = pl.cdiv(c, tile_c)

    # Pad target to num_n*tile_n with -1 (impossible class) so the kernel needs
    # no per-element row mask for the padded last row block.
    n_pad = num_n * tile_n
    tgt = target.astype(jnp.int32)
    if n_pad != n:
        tgt = jnp.concatenate([tgt, jnp.full((n_pad - n,), -1, jnp.int32)])
    tgt2d = tgt.reshape(n_pad, 1)

    out_bytes = num_n * 8 * 128 * 4
    cost = pl.CostEstimate(
        flops=2 * n * c,
        transcendentals=0,
        bytes_accessed=n * c * itemsize + n_pad * 4 + out_bytes,
    )

    # VMEM budget: double-buffered pred + target blocks + resident output block.
    pred_blk = _round_up(tile_n, sub) * max(_round_up(min(tile_c, c), 128), 128) * itemsize
    tgt_blk = _round_up(tile_n, 8) * 128 * 4
    out_blk = 8 * 128 * 4
    usage = 2 * pred_blk + 2 * tgt_blk + 2 * out_blk
    vmem_limit = min(max(2 * usage + (4 << 20), 16 << 20), 32 << 20)

    out = pl.pallas_call(
        _nll_partial_kernel,
        out_shape=jax.ShapeDtypeStruct((num_n * 8, 128), jnp.float32),
        grid=(num_n, num_c),
        in_specs=[
            pl.BlockSpec((tile_n, tile_c), lambda i, j: (i, j)),
            pl.BlockSpec((tile_n, 1), lambda i, j: (i, 0)),
        ],
        # Output block resident across the class axis (accumulator).
        out_specs=pl.BlockSpec((8, 128), lambda i, j: (i, 0)),
        compiler_params=pltpu.CompilerParams(
            dimension_semantics=("parallel", "arbitrary"),
            vmem_limit_bytes=vmem_limit),
        cost_estimate=cost,
    )(pred, tgt2d)

    # One (8,128) block per row-block, broadcast-filled with its partial sum.
    partials = out.reshape(num_n, 8, 128)[:, 0, 0]
    return -jnp.sum(partials) / jnp.float32(n)


if __name__ == "__main__":
    key = jax.random.PRNGKey(0)
    k1, k2, k3, k4, k5, k6 = jax.random.split(key, 6)

    # --- check 1: small demo shapes (batch=8, classes=32), f32, single block ---
    N, C = 8, 32
    logits = jax.random.normal(k1, (N, C), dtype=jnp.float32)
    pred = jax.nn.log_softmax(logits, axis=-1)
    target = jax.random.randint(k2, (N,), 0, C, dtype=jnp.int32)
    loss = nll_loss(pred, target)
    jax.block_until_ready(loss)
    ref = -jnp.mean(pred[jnp.arange(N), target])
    assert jnp.allclose(loss, ref, atol=1e-6, rtol=1e-6), (loss, ref)

    # --- check 2: multi-block tiled path (ragged N and C), bf16 input, -inf ---
    N2, C2 = 37, 160
    logits2 = jax.random.normal(k3, (N2, C2), dtype=jnp.float32)
    pred2 = jax.nn.log_softmax(logits2, axis=-1).astype(jnp.bfloat16)
    target2 = jax.random.randint(k4, (N2,), 0, C2, dtype=jnp.int32)
    target2 = target2.at[0].set(5)
    pred2 = pred2.at[0, 3].set(-jnp.inf)   # non-target -inf must NOT give NaN
    loss2 = nll_loss(pred2, target2, tile_n=16, tile_c=128)
    jax.block_until_ready(loss2)
    ref2 = -jnp.mean(pred2.astype(jnp.float32)[jnp.arange(N2), target2])
    assert bool(jnp.isfinite(loss2)), loss2
    assert jnp.allclose(loss2, ref2, atol=1e-4, rtol=1e-4), (loss2, ref2)

    # --- check 3: auto-tiling path with padded target rows (ragged N, odd C) ---
    N3, C3 = 300, 257
    logits3 = jax.random.normal(k5, (N3, C3), dtype=jnp.float32)
    pred3 = jax.nn.log_softmax(logits3, axis=-1)
    target3 = jax.random.randint(k6, (N3,), 0, C3, dtype=jnp.int32)
    loss3 = nll_loss(pred3, target3)
    jax.block_until_ready(loss3)
    ref3 = -jnp.mean(pred3[jnp.arange(N3), target3])
    assert jnp.allclose(loss3, ref3, atol=1e-5, rtol=1e-5), (loss3, ref3)

    print("KERNEL_OK")
</pallas_src>

<mosaic_0001>
module attributes {stable_mosaic.version = 11 : i64} {
  func.func @_nll_partial_kernel(%arg0: i32, %arg1: i32, %arg2: memref<8x32xf32, #tpu.memory_space<vmem>>, %arg3: memref<8x1xi32, #tpu.memory_space<vmem>>, %arg4: memref<8x128xf32, #tpu.memory_space<vmem>>) attributes {dimension_semantics = [#tpu.dimension_semantics<parallel>, #tpu.dimension_semantics<arbitrary>], iteration_bounds = array<i64: 1, 1>, scalar_prefetch = 0 : i64, scratch_operands = 0 : i64, tpu.core_type = #tpu.core_type<tc>, window_params = [{transform_indices = @transform_0, window_bounds = array<i64: 8, 32>}, {transform_indices = @transform_1, window_bounds = array<i64: 8, 1>}, {transform_indices = @transform_2, window_bounds = array<i64: 8, 128>}]} {
    %c0_i32 = arith.constant 0 : i32
    %0 = arith.cmpi eq, %arg1, %c0_i32 : i32
    %1 = arith.extui %0 : i1 to i32
    %c0_i32_0 = arith.constant 0 : i32
    %2 = arith.cmpi ne, %1, %c0_i32_0 : i32
    scf.if %2 {
      %cst_9 = arith.constant 0.000000e+00 : f32
      %21 = vector.broadcast %cst_9 : f32 to vector<8x128xf32>
      %c0_10 = arith.constant 0 : index
      %c0_11 = arith.constant 0 : index
      %22 = vector.load %arg4[%c0_10, %c0_11] : memref<8x128xf32, #tpu.memory_space<vmem>>, vector<8x128xf32>
      tpu.vector_store %arg4[%c0_10, %c0_11], %21 {strides = array<i32>} : memref<8x128xf32, #tpu.memory_space<vmem>>, vector<8x128xf32>,
    } else {
    }
    %c0 = arith.constant 0 : index
    %c0_1 = arith.constant 0 : index
    %3 = vector.load %arg2[%c0, %c0_1] : memref<8x32xf32, #tpu.memory_space<vmem>>, vector<8x32xf32>
    %c0_2 = arith.constant 0 : index
    %c0_3 = arith.constant 0 : index
    %4 = vector.load %arg3[%c0_2, %c0_3] : memref<8x1xi32, #tpu.memory_space<vmem>>, vector<8x1xi32>
    %c32_i32 = arith.constant 32 : i32
    %5 = arith.muli %arg1, %c32_i32 : i32
    %6 = vector.broadcast %5 : i32 to vector<8x1xi32>
    %7 = arith.subi %4, %6 : vector<8x1xi32>
    %8 = tpu.iota {dimensions = array<i32: 1>} : vector<8x32xi32>
    %9 = vector.broadcast %7 : vector<8x1xi32> to vector<8x32xi32>
    %10 = arith.cmpi eq, %8, %9 : vector<8x32xi32>
    %cst = arith.constant 0.000000e+00 : f32
    %11 = vector.broadcast %cst : f32 to vector<8x32xf32>
    %12 = arith.select %10, %3, %11 : vector<8x32xi1>, vector<8x32xf32>
    %13 = vector.shape_cast %12 : vector<8x32xf32> to vector<1x8x32xf32>
    %cst_4 = arith.constant dense<0.000000e+00> : vector<1xf32>
    %14 = vector.multi_reduction <add>, %13, %cst_4 [1, 2] : vector<1x8x32xf32> to vector<1xf32>
    %15 = vector.shape_cast %14 : vector<1xf32> to vector<1x1x1xf32>
    %16 = vector.extract %15[0, 0, 0] : f32 from vector<1x1x1xf32>
    %c0_5 = arith.constant 0 : index
    %c0_6 = arith.constant 0 : index
    %17 = vector.load %arg4[%c0_5, %c0_6] : memref<8x128xf32, #tpu.memory_space<vmem>>, vector<8x128xf32>
    %18 = vector.broadcast %16 : f32 to vector<8x128xf32>
    %19 = arith.addf %17, %18 : vector<8x128xf32>
    %c0_7 = arith.constant 0 : index
    %c0_8 = arith.constant 0 : index
    %20 = vector.load %arg4[%c0_7, %c0_8] : memref<8x128xf32, #tpu.memory_space<vmem>>, vector<8x128xf32>
    tpu.vector_store %arg4[%c0_7, %c0_8], %19 {strides = array<i32>} : memref<8x128xf32, #tpu.memory_space<vmem>>, vector<8x128xf32>,
    return
  }
  func.func @transform_0(%arg0: i32, %arg1: i32) -> (i32, i32) {
    %c0_i32 = arith.constant 0 : i32
    return %arg0, %arg1 : i32, i32
  }
  func.func @transform_1(%arg0: i32, %arg1: i32) -> (i32, i32) {
    %c0_i32 = arith.constant 0 : i32
    %c0_i32_0 = arith.constant 0 : i32
    return %arg0, %c0_i32 : i32, i32
  }
  func.func @transform_2(%arg0: i32, %arg1: i32) -> (i32, i32) {
    %c0_i32 = arith.constant 0 : i32
    %c0_i32_0 = arith.constant 0 : i32
    return %arg0, %c0_i32 : i32, i32
  }
}

</mosaic_0001>

<bundles_post_ra>
// kernel: tpu_custom_call.1
= control target key start
LH: loop header
LB: loop body
LE: loop exit
PB: predicated region body
PF: predicated region fallthrough
CT: control target
= control target key end

     0   :  { %s112_s0 = inlined_call_operand.vmem [shape: f32[8,32], index: 0, kind: input, shape index: {}]   ;;  %s113_s1 = inlined_call_operand.vmem [shape: s32[8,1], index: 1, kind: input, shape index: {}]   ;;  %s114_s2 = inlined_call_operand.hbm [shape: f32[8,128], index: 2, kind: output, shape index: {}]  }
   0x1   :  { %v18_v0 = vld [vmem:[%s113_s1] sm:$0xff] }
   0x2   :  { %7 = vsyncpa [#allocation3], 0  ;;  %v86_v1 = vmov 0   ;;  %v22_v2 = vlaneseq  ;;  %v17_v4 = vld [vmem:[%s112_s0] sm:$0xff]  ;;  %vm29_vm0 = vcmask 261120   ;;  %s87_s1 = smov [#allocation2]  }
   0x3   :  { %63 = vset.pattern.permute.xlu0 %v86_v1  ;;  %s50_s13 = sshll.u32 %s87_s1, 4  ;;  %s51_s13 = int_to_ptr.vmem [resolvable:$true] %s50_s13 }
   0x4   :  { %25 = vperm.xlu0 %63, %v18_v0   ;;  %v23_v3 = vand.u32 127, %v22_v2  ;;  %s64_s0 = scalar_lea.vmem %s51_s13, 128  ;;  %p69_p1 = scmp.lt.s32.totalorder %s51_s13, %s51_s13 }
   0x5   :  { %p65_p0 = scmp.ne.s32.totalorder %s51_s13, %s64_s0  ;;  %p70_p2 = scmp.lt.s32.totalorder %s64_s0, %s64_s0 }
   0x7   :  { %p71_p3 = por %p70_p2, %p69_p1 }
   0x9   :  { %p72_p4 = pnand %p71_p3, %p65_p0 }
  0x7f   :  { %v26_v5 = vpop.permute.xlu0 %25 }
  0x80   :  { %vm27_vm1 = vcmp.eq.s32.totalorder %v23_v3, %v26_v5 }
  0x81   :  { %v28_v6 = vsel %vm27_vm1, %v17_v4, 0.0 }
  0x82   :  { %v30_v7 = vsel %vm29_vm0, %v28_v6, 0.0 }
  0x83   :  { %31 = vadd.xlane.f32.xlu0 %v30_v7 }
 0x10c   :  { %v32_v8 = vpop.xlane.xlu0 %31 }
 0x10d   :  { %v33_v9 = vrot.slane %v32_v8, 4 }
 0x10f   :  { %v34_v10 = vadd.f32 %v33_v9, %v32_v8 }
 0x111   :  { %v35_v11 = vrot.slane %v34_v10, 2 }
 0x113   :  { %v36_v12 = vadd.f32 %v35_v11, %v34_v10 }
 0x115   :  { %v37_v13 = vrot.slane %v36_v12, 1 }
 0x117   :  { %v38_v14 = vadd.f32 %v37_v13, %v36_v12 }
 0x119   :  { %58 = vpush %v38_v14 }
 0x14a   :  { %s59_s14 = spop %58 }
 0x14b   :  { %v41_v15 = vstv %s59_s14 }
 0x14c   :  { %43 = vst [vmem:[#allocation2] sm:$0xff] %v41_v15 }
 0x14d   :  { %75 = shalt.err (!%p72_p4)
}
 0x14e   :  { %53 = dma.vmem_to_hbm [thread:$0]  %s51_s13, 128, %s114_s2, [#allocation3]  }
 0x14f   :  { %84 = dma.done.wait [#allocation3], 128  }
 0x150   :  { %85 = vsyncadd [#allocation3], 4294967168 }
 0x151   :  { %57 = vsyncpa [#allocation3], 1 }

</bundles_post_ra>
